<compile_context>
chip_gen: v6e
topology: v6e:2x2x1
jax: 0.10.0
libtpu: 0.0.40
codegen_flags: <defaults>
</compile_context>

<pallas_src>
import math
import functools

import jax
import jax.numpy as jnp
from jax.experimental import pallas as pl
from jax.experimental.pallas import tpu as pltpu


def _mha_kernel(x_ref,      # (S, D)       bf16  one batch element (shared across heads)
                wqkv_ref,   # (D, 3*dkp)   bf16  this head's fused [Wq*s | Wk | Wv]
                bqkv_ref,   # (1, 3*dkp)   f32   this head's fused [bq*s | bk | bv]
                wo_ref,     # (dkp, D)     bf16  this head's rows of W_o
                bo_ref,     # (1, D)       f32
                out_ref,    # (S, D)       f32   output block (revisited across heads)
                *rest,      # [attn_ref (S, S)], acc_ref (S, D) f32 scratch
                dkp: int):
    if len(rest) == 2:
        attn_ref, acc_ref = rest
    else:
        attn_ref = None
        (acc_ref,) = rest

    h = pl.program_id(1)

    @pl.when(h == 0)
    def _():
        acc_ref[...] = jnp.zeros_like(acc_ref)

    # Fused per-head Q/K/V projection: one (S, D) @ (D, 3*dkp) MXU matmul with
    # f32 accumulation, f32 bias add.
    qkv = jnp.dot(x_ref[...], wqkv_ref[...], preferred_element_type=jnp.float32)
    qkv = qkv + bqkv_ref[...]                            # (S, 3*dkp)

    # 128-aligned static lane slices (whole vregs, no masked copies).  The
    # 1/sqrt(d_k) scale is already folded into W_q / b_q in the wrapper.
    q = qkv[:, 0 * dkp:1 * dkp].astype(jnp.bfloat16)     # (S, dkp)
    k = qkv[:, 1 * dkp:2 * dkp].astype(jnp.bfloat16)
    v = qkv[:, 2 * dkp:3 * dkp].astype(jnp.bfloat16)

    # scores = q @ k^T: contract the last dims directly (no transpose).
    scores = jnp.einsum("qd,kd->qk", q, k,
                        preferred_element_type=jnp.float32)   # (S, S) f32

    # Numerically-stable, exact softmax (stored attention rows sum to 1).
    m = jnp.max(scores, axis=-1, keepdims=True)
    e = jnp.exp(scores - m)
    p = e / jnp.sum(e, axis=-1, keepdims=True)                # (S, S) f32

    if attn_ref is not None:
        attn_ref[...] = p.astype(attn_ref.dtype)

    # (dropout(p)) @ v  -- dropout is identity in eval mode.
    o = jnp.dot(p.astype(jnp.bfloat16), v,
                preferred_element_type=jnp.float32)           # (S, dkp)

    # Output projection: this head's contribution, accumulated over the head
    # grid axis (replaces the head-concat scratch + masked stores).
    acc_ref[...] += jnp.dot(o.astype(jnp.bfloat16), wo_ref[...],
                            preferred_element_type=jnp.float32)

    @pl.when(h == pl.num_programs(1) - 1)
    def _():
        out_ref[...] = (acc_ref[...] + bo_ref[...]).astype(out_ref.dtype)


def _prep_params(params, num_heads, d_k, dkp):
    """One-time weight prep: split per head, pad d_k -> dkp, fold q-scale, fuse QKV."""
    wq, bq, wk, bk, wv, bv, wo, bo = params
    D = wq.shape[0]
    scale = 1.0 / math.sqrt(d_k)
    pad = dkp - d_k

    def heads_w(w):            # (D, D) -> (H, D, d_k): head h's output columns
        return jnp.transpose(w.reshape(D, num_heads, d_k), (1, 0, 2))

    def heads_b(b):            # (D,) -> (H, 1, d_k)
        return b.reshape(num_heads, 1, d_k)

    def pad_last(a):
        if pad == 0:
            return a
        cfg = [(0, 0)] * (a.ndim - 1) + [(0, pad)]
        return jnp.pad(a, cfg)

    wq_h = pad_last(heads_w(wq) * scale)     # fold 1/sqrt(d_k) into W_q
    wk_h = pad_last(heads_w(wk))
    wv_h = pad_last(heads_w(wv))
    bq_h = pad_last(heads_b(bq) * scale)     # ... and into b_q
    bk_h = pad_last(heads_b(bk))
    bv_h = pad_last(heads_b(bv))

    wqkv_h = jnp.concatenate([wq_h, wk_h, wv_h], axis=-1).astype(jnp.bfloat16)  # (H, D, 3*dkp)
    bqkv_h = jnp.concatenate([bq_h, bk_h, bv_h], axis=-1)                        # (H, 1, 3*dkp) f32

    wo_h = wo.reshape(num_heads, d_k, D)                                         # (H, d_k, D)
    if pad:
        wo_h = jnp.pad(wo_h, ((0, 0), (0, pad), (0, 0)))                         # zero rows: no effect
    wo_h = wo_h.astype(jnp.bfloat16)                                             # (H, dkp, D)
    bo_2d = bo.reshape(1, D)                                                     # f32
    return wqkv_h, bqkv_h, wo_h, bo_2d


def self_attention(x, params, *, num_heads, return_attn=True, attn_dtype=jnp.float32):
    """x: (B, S, D) float32.

    Returns (output (B,S,D) f32, attention (B,H,S,S) attn_dtype) if return_attn,
    else just output.
    """
    B, S, D = x.shape
    assert D % num_heads == 0
    d_k = D // num_heads
    # Pad each head's feature dim up to a lane-dense multiple of 128 (zero
    # padding is exact: padded q/k/v columns and W_o rows are all zero).
    dkp = d_k if d_k % 128 == 0 else ((d_k + 127) // 128) * 128

    wqkv_h, bqkv_h, wo_h, bo_2d = _prep_params(params, num_heads, d_k, dkp)
    x_b = x.astype(jnp.bfloat16)

    kernel = functools.partial(_mha_kernel, dkp=dkp)

    in_specs = [
        pl.BlockSpec((None, S, D), lambda b, h: (b, 0, 0)),        # x: constant across h -> fetched once per b
        pl.BlockSpec((None, D, 3 * dkp), lambda b, h: (h, 0, 0)),  # fused per-head W_qkv
        pl.BlockSpec((None, 1, 3 * dkp), lambda b, h: (h, 0, 0)),  # fused per-head b_qkv
        pl.BlockSpec((None, dkp, D), lambda b, h: (h, 0, 0)),      # per-head W_o rows
        pl.BlockSpec((1, D), lambda b, h: (0, 0)),                 # b_o (constant)
    ]
    out_spec_o = pl.BlockSpec((None, S, D), lambda b, h: (b, 0, 0))  # revisited across h (accumulator)
    out_shape_o = jax.ShapeDtypeStruct((B, S, D), jnp.float32)

    if return_attn:
        out_shape = (out_shape_o,
                     jax.ShapeDtypeStruct((B, num_heads, S, S), attn_dtype))
        out_specs = (out_spec_o,
                     pl.BlockSpec((None, None, S, S), lambda b, h: (b, h, 0, 0)))
    else:
        out_shape = out_shape_o
        out_specs = out_spec_o

    return pl.pallas_call(
        kernel,
        out_shape=out_shape,
        grid=(B, num_heads),
        in_specs=in_specs,
        out_specs=out_specs,
        scratch_shapes=[pltpu.VMEM((S, D), jnp.float32)],
        compiler_params=pltpu.CompilerParams(
            dimension_semantics=("parallel", "arbitrary"),
        ),
    )(x_b, wqkv_h, bqkv_h, wo_h, bo_2d)


def init_params(key, d_model):
    """Deterministic nn.Linear-style init: W ~ U(-1/sqrt(D), 1/sqrt(D))."""
    bound = 1.0 / math.sqrt(d_model)
    keys = jax.random.split(key, 8)

    def lin(kw, kb):
        w = jax.random.uniform(kw, (d_model, d_model), jnp.float32, -bound, bound)
        b = jax.random.uniform(kb, (d_model,), jnp.float32, -bound, bound)
        return w, b

    wq, bq = lin(keys[0], keys[1])
    wk, bk = lin(keys[2], keys[3])
    wv, bv = lin(keys[4], keys[5])
    wo, bo = lin(keys[6], keys[7])
    return (wq, bq, wk, bk, wv, bv, wo, bo)


def reference_self_attention(x, params, num_heads):
    """Pure-JAX f32 reference mirroring the PyTorch forward (eval mode, mask=None)."""
    wq, bq, wk, bk, wv, bv, wo, bo = params
    B, S, D = x.shape
    d_k = D // num_heads

    def proj(w, b):
        y = x @ w + b
        return y.reshape(B, S, num_heads, d_k).transpose(0, 2, 1, 3)  # (B,H,S,dk)

    q, k, v = proj(wq, bq), proj(wk, bk), proj(wv, bv)
    scores = jnp.einsum("bhqd,bhkd->bhqk", q / math.sqrt(d_k), k)
    attn = jax.nn.softmax(scores, axis=-1)
    out = jnp.einsum("bhqk,bhkd->bhqd", attn, v)
    out = out.transpose(0, 2, 1, 3).reshape(B, S, D)
    out = out @ wo + bo
    return out, attn


if __name__ == "__main__":
    batch_size, seq_len, d_model, num_heads = 2, 8, 32, 8

    key = jax.random.PRNGKey(0)
    k_x, k_p = jax.random.split(key)
    x = jax.random.normal(k_x, (batch_size, seq_len, d_model), jnp.float32)
    params = init_params(k_p, d_model)

    out, attn = self_attention(x, params, num_heads=num_heads)
    out = jax.block_until_ready(out)
    attn = jax.block_until_ready(attn)

    ref_out, ref_attn = reference_self_attention(x, params, num_heads)
    assert out.shape == (batch_size, seq_len, d_model)
    assert attn.shape == (batch_size, num_heads, seq_len, seq_len)
    # Matmul operands are bf16 (f32 accumulation); softmax is exact f32.
    assert jnp.allclose(out, ref_out, atol=3e-2, rtol=3e-2)
    assert jnp.allclose(attn, ref_attn, atol=2e-2, rtol=2e-2)

    # Optional fast path: skip the S^2-sized attention-weights HBM write.
    out_only = jax.block_until_ready(
        self_attention(x, params, num_heads=num_heads, return_attn=False))
    assert jnp.allclose(out_only, ref_out, atol=3e-2, rtol=3e-2)

    print("KERNEL_OK")
</pallas_src>

<mosaic_0001>
module attributes {stable_mosaic.version = 11 : i64} {
  func.func @_mha_kernel(%arg0: i32, %arg1: i32, %arg2: memref<1x8x32xbf16, #tpu.memory_space<vmem>>, %arg3: memref<1x32x384xbf16, #tpu.memory_space<vmem>>, %arg4: memref<1x1x384xf32, #tpu.memory_space<vmem>>, %arg5: memref<1x128x32xbf16, #tpu.memory_space<vmem>>, %arg6: memref<1x32xf32, #tpu.memory_space<vmem>>, %arg7: memref<1x8x32xf32, #tpu.memory_space<vmem>>, %arg8: memref<1x1x8x8xf32, #tpu.memory_space<vmem>>, %arg9: memref<8x32xf32, #tpu.memory_space<vmem>>) attributes {dimension_semantics = [#tpu.dimension_semantics<parallel>, #tpu.dimension_semantics<arbitrary>], iteration_bounds = array<i64: 2, 8>, scalar_prefetch = 0 : i64, scratch_operands = 1 : i64, tpu.core_type = #tpu.core_type<tc>, window_params = [{transform_indices = @transform_0, window_bounds = array<i64: 1, 8, 32>}, {transform_indices = @transform_1, window_bounds = array<i64: 1, 32, 384>}, {transform_indices = @transform_2, window_bounds = array<i64: 1, 1, 384>}, {transform_indices = @transform_3, window_bounds = array<i64: 1, 128, 32>}, {pipeline_mode = #tpu.pipeline_mode<synchronous>, transform_indices = @transform_4, window_bounds = array<i64: 1, 32>}, {transform_indices = @transform_5, window_bounds = array<i64: 1, 8, 32>}, {transform_indices = @transform_6, window_bounds = array<i64: 1, 1, 8, 8>}]} {
    %c0_i32 = arith.constant 0 : i32
    %0 = arith.cmpi eq, %arg1, %c0_i32 : i32
    %1 = arith.extui %0 : i1 to i32
    %c0_i32_0 = arith.constant 0 : i32
    %2 = arith.cmpi ne, %1, %c0_i32_0 : i32
    scf.if %2 {
      %cst_26 = arith.constant 0.000000e+00 : f32
      %43 = vector.broadcast %cst_26 : f32 to vector<8x32xf32>
      %c0_27 = arith.constant 0 : index
      %c0_28 = arith.constant 0 : index
      %44 = vector.load %arg9[%c0_27, %c0_28] : memref<8x32xf32, #tpu.memory_space<vmem>>, vector<8x32xf32>
      tpu.vector_store %arg9[%c0_27, %c0_28], %43 {strides = array<i32>} : memref<8x32xf32, #tpu.memory_space<vmem>>, vector<8x32xf32>,
    } else {
    }
    %c0 = arith.constant 0 : index
    %c0_1 = arith.constant 0 : index
    %c0_2 = arith.constant 0 : index
    %3 = vector.load %arg2[%c0, %c0_1, %c0_2] : memref<1x8x32xbf16, #tpu.memory_space<vmem>>, vector<1x8x32xbf16>
    %4 = vector.shape_cast %3 : vector<1x8x32xbf16> to vector<8x32xbf16>
    %c0_3 = arith.constant 0 : index
    %c0_4 = arith.constant 0 : index
    %c0_5 = arith.constant 0 : index
    %5 = vector.load %arg3[%c0_3, %c0_4, %c0_5] : memref<1x32x384xbf16, #tpu.memory_space<vmem>>, vector<1x32x384xbf16>
    %6 = vector.shape_cast %5 : vector<1x32x384xbf16> to vector<32x384xbf16>
    %cst = arith.constant dense<0.000000e+00> : vector<8x384xf32>
    %7 = tpu.matmul %4, %6, %cst {dimension_numbers = #tpu.dot_dimension_numbers<[1], [0], [0], [1], [0, 0, 1, 1], [], []>} : vector<8x32xbf16>, vector<32x384xbf16>, vector<8x384xf32> -> vector<8x384xf32>
    %c0_6 = arith.constant 0 : index
    %c0_7 = arith.constant 0 : index
    %c0_8 = arith.constant 0 : index
    %8 = vector.load %arg4[%c0_6, %c0_7, %c0_8] : memref<1x1x384xf32, #tpu.memory_space<vmem>>, vector<1x1x384xf32>
    %9 = vector.shape_cast %8 : vector<1x1x384xf32> to vector<1x384xf32>
    %10 = vector.broadcast %9 : vector<1x384xf32> to vector<8x384xf32>
    %11 = arith.addf %7, %10 : vector<8x384xf32>
    %12 = vector.extract_strided_slice %11 {offsets = [0, 0], sizes = [8, 128], strides = [1, 1]} : vector<8x384xf32> to vector<8x128xf32>
    %13 = arith.truncf %12 : vector<8x128xf32> to vector<8x128xbf16>
    %14 = vector.extract_strided_slice %11 {offsets = [0, 128], sizes = [8, 128], strides = [1, 1]} : vector<8x384xf32> to vector<8x128xf32>
    %15 = arith.truncf %14 : vector<8x128xf32> to vector<8x128xbf16>
    %16 = vector.extract_strided_slice %11 {offsets = [0, 256], sizes = [8, 128], strides = [1, 1]} : vector<8x384xf32> to vector<8x128xf32>
    %17 = arith.truncf %16 : vector<8x128xf32> to vector<8x128xbf16>
    "tpu.trace_start"() <{level = 10 : i32, message = "qd,kd->qk"}> : () -> ()
    %cst_9 = arith.constant dense<0.000000e+00> : vector<8x8xf32>
    %18 = tpu.matmul %13, %15, %cst_9 {dimension_numbers = #tpu.dot_dimension_numbers<[1], [1], [0], [0], [0, 0, 1, 0], [], []>} : vector<8x128xbf16>, vector<8x128xbf16>, vector<8x8xf32> -> vector<8x8xf32>
    "tpu.trace_stop"() : () -> ()
    %cst_10 = arith.constant dense<0xFF800000> : vector<8xf32>
    %19 = vector.multi_reduction <maximumf>, %18, %cst_10 [1] : vector<8x8xf32> to vector<8xf32>
    %20 = vector.shape_cast %19 : vector<8xf32> to vector<8x1xf32>
    %21 = vector.broadcast %20 : vector<8x1xf32> to vector<8x8xf32>
    %22 = arith.subf %18, %21 : vector<8x8xf32>
    %23 = math.exp %22 : vector<8x8xf32>
    %cst_11 = arith.constant dense<0.000000e+00> : vector<8xf32>
    %24 = vector.multi_reduction <add>, %23, %cst_11 [1] : vector<8x8xf32> to vector<8xf32>
    %25 = vector.shape_cast %24 : vector<8xf32> to vector<8x1xf32>
    %26 = vector.broadcast %25 : vector<8x1xf32> to vector<8x8xf32>
    %27 = arith.divf %23, %26 : vector<8x8xf32>
    %c0_12 = arith.constant 0 : index
    %c0_13 = arith.constant 0 : index
    %c0_14 = arith.constant 0 : index
    %c0_15 = arith.constant 0 : index
    %28 = vector.load %arg8[%c0_12, %c0_13, %c0_14, %c0_15] : memref<1x1x8x8xf32, #tpu.memory_space<vmem>>, vector<1x1x8x8xf32>
    %29 = vector.shape_cast %28 : vector<1x1x8x8xf32> to vector<8x8xf32>
    %30 = vector.shape_cast %27 : vector<8x8xf32> to vector<1x1x8x8xf32>
    tpu.vector_store %arg8[%c0_12, %c0_13, %c0_14, %c0_15], %30 {strides = array<i32>} : memref<1x1x8x8xf32, #tpu.memory_space<vmem>>, vector<1x1x8x8xf32>,
    %31 = arith.truncf %27 : vector<8x8xf32> to vector<8x8xbf16>
    %cst_16 = arith.constant dense<0.000000e+00> : vector<8x128xf32>
    %32 = tpu.matmul %31, %17, %cst_16 {dimension_numbers = #tpu.dot_dimension_numbers<[1], [0], [0], [1], [0, 0, 1, 1], [], []>} : vector<8x8xbf16>, vector<8x128xbf16>, vector<8x128xf32> -> vector<8x128xf32>
    %c0_17 = arith.constant 0 : index
    %c0_18 = arith.constant 0 : index
    %33 = vector.load %arg9[%c0_17, %c0_18] : memref<8x32xf32, #tpu.memory_space<vmem>>, vector<8x32xf32>
    %34 = arith.truncf %32 : vector<8x128xf32> to vector<8x128xbf16>
    %c0_19 = arith.constant 0 : index
    %c0_20 = arith.constant 0 : index
    %c0_21 = arith.constant 0 : index
    %35 = vector.load %arg5[%c0_19, %c0_20, %c0_21] : memref<1x128x32xbf16, #tpu.memory_space<vmem>>, vector<1x128x32xbf16>
    %36 = vector.shape_cast %35 : vector<1x128x32xbf16> to vector<128x32xbf16>
    %cst_22 = arith.constant dense<0.000000e+00> : vector<8x32xf32>
    %37 = tpu.matmul %34, %36, %cst_22 {dimension_numbers = #tpu.dot_dimension_numbers<[1], [0], [0], [1], [0, 0, 1, 1], [], []>} : vector<8x128xbf16>, vector<128x32xbf16>, vector<8x32xf32> -> vector<8x32xf32>
    %38 = arith.addf %33, %37 : vector<8x32xf32>
    %c0_23 = arith.constant 0 : index
    %c0_24 = arith.constant 0 : index
    %39 = vector.load %arg9[%c0_23, %c0_24] : memref<8x32xf32, #tpu.memory_space<vmem>>, vector<8x32xf32>
    tpu.vector_store %arg9[%c0_23, %c0_24], %38 {strides = array<i32>} : memref<8x32xf32, #tpu.memory_space<vmem>>, vector<8x32xf32>,
    %c7_i32 = arith.constant 7 : i32
    %40 = arith.cmpi eq, %arg1, %c7_i32 : i32
    %41 = arith.extui %40 : i1 to i32
    %c0_i32_25 = arith.constant 0 : i32
    %42 = arith.cmpi ne, %41, %c0_i32_25 : i32
    scf.if %42 {
      %c0_26 = arith.constant 0 : index
      %c0_27 = arith.constant 0 : index
      %43 = vector.load %arg9[%c0_26, %c0_27] : memref<8x32xf32, #tpu.memory_space<vmem>>, vector<8x32xf32>
      %c0_28 = arith.constant 0 : index
      %c0_29 = arith.constant 0 : index
      %44 = vector.load %arg6[%c0_28, %c0_29] : memref<1x32xf32, #tpu.memory_space<vmem>>, vector<1x32xf32>
      %45 = vector.broadcast %44 : vector<1x32xf32> to vector<8x32xf32>
      %46 = arith.addf %43, %45 : vector<8x32xf32>
      %c0_30 = arith.constant 0 : index
      %c0_31 = arith.constant 0 : index
      %c0_32 = arith.constant 0 : index
      %47 = vector.load %arg7[%c0_30, %c0_31, %c0_32] : memref<1x8x32xf32, #tpu.memory_space<vmem>>, vector<1x8x32xf32>
      %48 = vector.shape_cast %47 : vector<1x8x32xf32> to vector<8x32xf32>
      %49 = vector.shape_cast %46 : vector<8x32xf32> to vector<1x8x32xf32>
      tpu.vector_store %arg7[%c0_30, %c0_31, %c0_32], %49 {strides = array<i32>} : memref<1x8x32xf32, #tpu.memory_space<vmem>>, vector<1x8x32xf32>,
    } else {
    }
    return
  }
  func.func @transform_0(%arg0: i32, %arg1: i32) -> (i32, i32, i32) {
    %c0_i32 = arith.constant 0 : i32
    %c0_i32_0 = arith.constant 0 : i32
    %c0_i32_1 = arith.constant 0 : i32
    return %arg0, %c0_i32, %c0_i32_0 : i32, i32, i32
  }
  func.func @transform_1(%arg0: i32, %arg1: i32) -> (i32, i32, i32) {
    %c0_i32 = arith.constant 0 : i32
    %c0_i32_0 = arith.constant 0 : i32
    %c0_i32_1 = arith.constant 0 : i32
    return %arg1, %c0_i32, %c0_i32_0 : i32, i32, i32
  }
  func.func @transform_2(%arg0: i32, %arg1: i32) -> (i32, i32, i32) {
    %c0_i32 = arith.constant 0 : i32
    %c0_i32_0 = arith.constant 0 : i32
    %c0_i32_1 = arith.constant 0 : i32
    return %arg1, %c0_i32, %c0_i32_0 : i32, i32, i32
  }
  func.func @transform_3(%arg0: i32, %arg1: i32) -> (i32, i32, i32) {
    %c0_i32 = arith.constant 0 : i32
    %c0_i32_0 = arith.constant 0 : i32
    %c0_i32_1 = arith.constant 0 : i32
    return %arg1, %c0_i32, %c0_i32_0 : i32, i32, i32
  }
  func.func @transform_4(%arg0: i32, %arg1: i32) -> (i32, i32) {
    %c0_i32 = arith.constant 0 : i32
    %c0_i32_0 = arith.constant 0 : i32
    %c0_i32_1 = arith.constant 0 : i32
    return %c0_i32, %c0_i32_0 : i32, i32
  }
  func.func @transform_5(%arg0: i32, %arg1: i32) -> (i32, i32, i32) {
    %c0_i32 = arith.constant 0 : i32
    %c0_i32_0 = arith.constant 0 : i32
    %c0_i32_1 = arith.constant 0 : i32
    return %arg0, %c0_i32, %c0_i32_0 : i32, i32, i32
  }
  func.func @transform_6(%arg0: i32, %arg1: i32) -> (i32, i32, i32, i32) {
    %c0_i32 = arith.constant 0 : i32
    %c0_i32_0 = arith.constant 0 : i32
    %c0_i32_1 = arith.constant 0 : i32
    return %arg0, %arg1, %c0_i32, %c0_i32_0 : i32, i32, i32, i32
  }
}

</mosaic_0001>

<bundles_post_ra>
// kernel: tpu_custom_call.1
= control target key start
LH: loop header
LB: loop body
LE: loop exit
PB: predicated region body
PF: predicated region fallthrough
CT: control target
= control target key end

     0   :  { %s1566_s0 = inlined_call_operand.vmem [shape: bf16[2,8,32], index: 0, kind: input, shape index: {}]   ;;  %s1567_s1 = inlined_call_operand.vmem [shape: bf16[8,32,384], index: 1, kind: input, shape index: {}]   ;;  %s1568_s2 = inlined_call_operand.vmem [shape: f32[8,1,384], index: 2, kind: input, shape index: {}]   ;;  %s1569_s3 = inlined_call_operand.vmem [shape: bf16[8,128,32], index: 3, kind: input, shape index: {}]   ;;  %s1570_s4 = inlined_call_operand.vmem [shape: f32[1,32], index: 4, kind: input, shape index: {}]   ;;  %s1571_s5 = inlined_call_operand.hbm [shape: f32[2,8,32], index: 5, kind: output, shape index: {0}]   ;;  %s1572_s6 = inlined_call_operand.hbm [shape: f32[2,8,8,8], index: 6, kind: output, shape index: {1}]  }
   0x1   :  { %1590 = sst [smem:[#allocation23_spill]] %s1572_s6 }
   0x2   :  { %12 = vsyncpa [#allocation4], 0 }
   0x3   :  { %14 = vsyncpa [#allocation4 + $0x1], 0 }
   0x4   :  { %15 = vsyncpa [#allocation6], 0 }
   0x5   :  { %17 = vsyncpa [#allocation6 + $0x1], 0  ;;  %s1289_s21 = smov 0   ;;  %s1291_s22 = smov 0  }
   0x6   :  { %s1293_s23 = smov 0   ;;  %s1295_s24 = smov 0  }
   0x7   :  { %s1297_s25 = smov 0   ;;  %s1299_s26 = smov 0  }
   0x8   :  { %s1301_s27 = smov 0   ;;  %s1303_s28 = smov 0  }
   0x9   :  { %s1305_s29 = smov 0   ;;  %s1307_s30 = smov 0  }
   0xa   :  { %s1309_s7 = smov 0  }
   0xb LB: > { %1591 = sst [smem:[#allocation9_spill]] %s1206_s21  ;;  %s879_s8 = sadd.s32 4294967295, %s1246_s7   ;;  %s1246_s7 = sphi %s1309_s7, %s23_s7   ;;  %s1242_s30 = sphi %s1307_s30, %s1629_s30   ;;  %s1238_s29 = sphi %s1305_s29, %s1628_s29   ;;  %s1234_s28 = sphi %s1303_s28, %s1627_s28   ;;  %s1230_s27 = sphi %s1301_s27, %s1626_s27   ;;  %s1226_s26 = sphi %s1299_s26, %s1625_s26   ;;  %s1222_s25 = sphi %s1297_s25, %s1633_s25   ;;  %s1218_s24 = sphi %s1295_s24, %s1632_s24   ;;  %s1214_s23 = sphi %s1293_s23, %s1623_s23   ;;  %s1210_s22 = sphi %s1291_s22, %s1631_s22   ;;  %s1206_s21 = sphi %s1289_s21, %s1630_s21  }
   0xc   : > { %1592 = sst [smem:[#allocation10_spill]] %s1214_s23  ;;  %s880_s9 = sadd.s32 4294967294, %s1246_s7  }
   0xd   : > { %1593 = sst [smem:[#allocation11_spill]] %s1218_s24  ;;  %s32_s10 = sadd.s32 1, %s1238_s29 }
   0xe   : > { %1594 = sst [smem:[#allocation12_spill]] %s1226_s26  ;;  %s35_s11 = sadd.s32 1, %s1242_s30 }
   0xf   : > { %1595 = sst [smem:[#allocation13_spill]] %s1238_s29  ;;  %p33_p0 = scmp.ge.s32.totalorder %s32_s10, 8 }
  0x10   : > { %1596 = sst [smem:[#allocation14_spill]] %s1242_s30  ;;  %s167_s12 = sadd.s32 1, %s1226_s26 }
  0x11   : > { %1597 = sst [smem:[#allocation15_spill]] %s1246_s7  ;;  %p177_p1 = scmp.ne.s32.totalorder %s1226_s26, %s1222_s25 }
  0x12   : > { %p1351_p2 = scmp.eq.s32.totalorder %s879_s8, 15  ;;  %s1635_s10 = smov (%p33_p0, %s32_s10), 0 }
  0x13   : > { %1599 = sst [smem:[#allocation16_spill]] %s1635_s10  ;;  %s1637_s11 = smov (!%p33_p0, %s35_s11), %s1242_s30 }
  0x14   : > { %p1360_p3 = por %p1351_p2, %p177_p1  ;;  %p183_p4 = scmp.ne.s32.totalorder %s1222_s25, %s1218_s24 }
  0x15   : > { %p37_p5 = scmp.ge.s32.totalorder %s1637_s11, 2  ;;  %p1366_p6 = scmp.eq.s32.totalorder %s880_s9, 15 }
  0x16   : > { %s191_s16 = ssub.s32 %s1238_s29, %s1635_s10  ;;  %s195_s17 = sadd.s32 1, %s1214_s23 }
  0x17   : > { %s1639_s11 = smov (%p37_p5, %s1637_s11), 0  ;;  %p1377_p7 = por %p1366_p6, %p183_p4 }
  0x18   : > { %1602 = sst [smem:[#allocation17_spill]] %s1639_s11  ;;  %p205_p8 = scmp.ne.s32.totalorder %s1214_s23, %s1210_s22 }
  0x19   : > { %s1603_s18 = scalar_select %p1377_p7, 1, 0 }
  0x1a   : > { %s164_s19 = ssub.s32 %s1242_s30, %s1639_s11  ;;  %p211_p9 = scmp.ne.s32.totalorder %s1210_s22, %s1206_s21 }
  0x1b   : > { %1604 = sst [smem:[#allocation18_spill]] %s1603_s18  ;;  %p165_p10 = scmp.eq.s32.totalorder %s164_s19, 0 }
  0x1c   : > { %s192_s20 = sor.u32 %s191_s16, %s164_s19  ;;  %p1389_p12 = por %p205_p8, %p1351_p2 }
  0x1d   : > { %p193_p11 = scmp.eq.s32.totalorder %s192_s20, 0  ;;  %p1401_p13 = por %p211_p9, %p1366_p6 }
  0x1e   : > { %s1605_s8 = scalar_select %p1389_p12, 1, 0 }
  0x1f   : > { %s1394_s9 = scalar_select %p165_p10, %s1226_s26, %s167_s12  }
  0x20   : > { %1606 = sst [smem:[#allocation19_spill]] %s1605_s8  ;;  %p883_p0 = scmp.ge.s32.totalorder %s1246_s7, 1 }
  0x21   : > { %1607 = sst [smem:[#allocation20_spill]] %s1394_s9  ;;  %p263_p1 = scmp.lt.s32.totalorder %s1246_s7, 17 }
  0x22   : > { %s1397_s10 = scalar_select %p193_p11, %s1214_s23, %s195_s17  }
  0x23   : > { %s1609_s29 = scalar_select %p1401_p13, 1, 0 }
  0x24   : > { %1608 = sst [smem:[#allocation21_spill]] %s1397_s10  ;;  %p264_p4 = pnand %p883_p0, %p263_p1 }
  0x25   : > { %1610 = sst [smem:[#allocation22_spill]] %s1609_s29  ;;  %s1580_s12 = sand.u32 (!%p264_p4), 1, %s1222_s25  }
  0x26   : > { %267 = sbr.rel (%p264_p4) target bundleno = 1225 (0x4c9), region = 40  ;;  %s1583_s13 = sand.u32 (!%p264_p4), 1, %s1210_s22  }
  0x27   : > { %s1411_s15 = sshll.u32 (!%p264_p4), %s1580_s12, 3  ;;  %s1415_s16 = sshll.u32 (!%p264_p4), %s1583_s13, 3 }
  0x28   : > { %p311_p2 = scmp.lt.s32.totalorder (!%p264_p4), %s1234_s28, 1  ;;  %p315_p5 = scmp.lt.s32.totalorder (!%p264_p4), %s1230_s27, 7 }
  0x29   : > { %s303_s8 = scalar_lea.vmem (!%p264_p4), [#allocation3], %s1411_s15  ;;  %s310_s30 = scalar_lea.vmem (!%p264_p4), [#allocation5], %s1415_s16 }
  0x2a   : > { %p890_p6 = scmp.ne.s32.totalorder (!%p264_p4), %s1230_s27, 0 }
  0x2b   : > { %s312_s17 = scalar_select %p311_p2, %s1234_s28, 1 }
  0x2c   : > { %s316_s19 = scalar_select %p315_p5, %s1230_s27, 7 }
  0x2d   : > { %s886_s20 = sshll.u32 %s312_s17, 2  ;;  %333 = sbr.rel (%p890_p6) target bundleno = 52 (0x34), region = 44 }
  0x2e   : > { %s314_s9 = scalar_lea.vmem %s1566_s0, %s886_s20  ;;  %s974_s26 = smul.u32 48, %s316_s19 }
  0x2f   : > { %s975_s10 = smul.u32 3, %s316_s19  ;;  %s917_s23 = sshll.u32 %s316_s19, 6 }
  0x30   : > { %s319_s21 = scalar_lea.vmem %s1567_s1, %s974_s26  ;;  %s1430_s24 = scalar_lea.vmem %s1569_s3, %s917_s23 }
  0x31   : > { %s1435_s17 = scalar_lea.vmem %s1568_s2, %s975_s10 }
  0x32   : > { %vm334_vm0 = vcmask 261120   ;;  %v1248_v0 = vmov 0.0  }
  0x33   : > { %335 = vst.msk [vmem:[#allocation2] sm:$0xff] %vm334_vm0, %v1248_v0 }
  0x34 PF: > { %v1080_v1 = vld [vmem:[%s319_s21 + $0x1c] ss:$12 sps:$4 sm:$0xff]   ;;  %v1082_v2 = vld [vmem:[%s319_s21 + $0x18] ss:$12 sps:$4 sm:$0xff]   ;;  %v1249_v3 = vmov 0   ;;  %v1250_v5 = vmov 0.0   ;;  %v347_v10 = vlaneseq }
  0x35   : > { %430 = vmatprep.mubr.bf16.mxu1 %v1249_v3  ;;  %410 = vmatprep.subr.bf16.mxu1 %v1080_v1  ;;  %v1083_v4 = vld [vmem:[%s319_s21 + $0x4] ss:$12 sps:$4 sm:$0xff]   ;;  %v1085_v6 = vld [vmem:[%s319_s21] ss:$12 sps:$4 sm:$0xff]   ;;  %vm394_vm1 = vcmask 261120   ;;  %vm1251_vm2 = vmmov 0  }
  0x36   : > { %954 = vmatprep.subr.bf16.mxu0 %v1250_v5  ;;  %411 = vmatpush1.bf16.msra.mxu1 %v1082_v2  ;;  %v336_v7 = vld [vmem:[%s314_s9] sm:$0xf]  ;;  %v1087_v9 = vld [vmem:[%s319_s21 + $0x8] ss:$12 sps:$4 sm:$0xff]   ;;  %v348_v11 = vshrl.u32 %v347_v10, 7  ;;  %vm539_vm3 = vcmask 1043456  }
  0x37   : > { %412 = vmatprep.subr.bf16.mxu1 %v1083_v4  ;;  %v1086_v8 = vld [vmem:[%s319_s21 + $0x20] ss:$12 sps:$4 sm:$0xff]   ;;  %970 = vmatprep.mubr.msk.bf16.mxu0 %vm1251_vm2, %v1250_v5  ;;  %vm522_vm4 = vcmask 64512   ;;  %v1088_v44 = vld [vmem:[%s1430_s24 + $0x38] sm:$0xff]   ;;  %v1089_v45 = vld [vmem:[%s1430_s24 + $0x30] sm:$0xff]   ;;  %p908_p8 = scmp.ne.s32.totalorder %s1230_s27, 7 }
  0x38   : > { %v353_v12 = vsub.s32 1, %v348_v11  ;;  %v345_v13 = vld [vmem:[%s1435_s17] sm:$0x7]  ;;  %v349_v15 = vsub.s32 0, %v348_v11  ;;  %v357_v25 = vsub.s32 2, %v348_v11  ;;  %955 = vmatpush3.bf16.msra.mxu0 %v1088_v44  ;;  %v1090_v46 = vld [vmem:[%s1430_s24 + $0x28] sm:$0xff]  }
  0x39   : > { %956 = vmatprep.subr.bf16.mxu0 %v1250_v5  ;;  %v1091_v47 = vld [vmem:[%s1430_s24 + $0x20] sm:$0xff]   ;;  %v1092_v48 = vld [vmem:[%s1430_s24 + $0x18] sm:$0xff]   ;;  %v1093_v49 = vld [vmem:[%s1430_s24 + $0x10] sm:$0xff]  }
  0x3a   : > { %413 = vmatpush1.bf16.msra.mxu1 %v1085_v6  ;;  %v354_v14 = vrot.slane %v345_v13, %v353_v12  ;;  %v350_v19 = vrot.slane %v345_v13, %v349_v15  ;;  %v358_v26 = vrot.slane %v345_v13, %v357_v25  ;;  %v1094_v50 = vld [vmem:[%s1430_s24 + $0x8] sm:$0xff]   ;;  %v1095_v55 = vld [vmem:[%s1430_s24] sm:$0xff]  }
  0x3b   : > { %934 = vmatprep.subr.bf16.mxu1 %v1250_v5  ;;  %v583_v61 = vld [vmem:[#allocation2] sm:$0xff] }
  0x3c   : > { %957 = vmatpush3.bf16.msra.mxu0 %v1089_v45 }
  0x3d   : > { %897 = vmatmul.mubr.msk.bf16.vlgmr.msra.gmra.mxu1 %vm394_vm1, %v336_v7  ;;  %958 = vmatprep.subr.bf16.mxu0 %v1250_v5 }
  0x3e   : > { %935 = vmatpush3.bf16.msra.mxu1 %v1086_v8  ;;  %938 = vmatprep.mubr.msk.bf16.mxu1 %vm1251_vm2, %v1250_v5 }
  0x3f   : > { %936 = vmatprep.subr.bf16.mxu1 %v1250_v5 }
  0x40   : > { %959 = vmatpush3.bf16.msra.mxu0 %v1090_v46 }
  0x41   : > { %960 = vmatprep.subr.bf16.mxu0 %v1250_v5 }
  0x42   : > { %937 = vmatpush3.bf16.msra.mxu1 %v1087_v9 }
  0x43   : > { %942 = vmatprep.subr.bf16.mxu1 %v1250_v5 }
  0x44   : > { %961 = vmatpush3.bf16.msra.mxu0 %v1091_v47 }
  0x45   : > { %939 = vmatmul.mubr.msk.bf16.vlgmr.msra.gmra.mxu1 %vm394_vm1, %v336_v7  ;;  %962 = vmatprep.subr.bf16.mxu0 %v1250_v5 }
  0x46   : > { %944 = vmatprep.mubr.msk.bf16.mxu1 %vm1251_vm2, %v1250_v5 }
  0x48   : > { %963 = vmatpush3.bf16.msra.mxu0 %v1092_v48 }
  0x49   : > { %964 = vmatprep.subr.bf16.mxu0 %v1250_v5 }
  0x4c   : > { %965 = vmatpush3.bf16.msra.mxu0 %v1093_v49 }
  0x4d   : > { %966 = vmatprep.subr.bf16.mxu0 %v1250_v5 }
  0x50   : > { %967 = vmatpush3.bf16.msra.mxu0 %v1094_v50 }
  0x51   : > { %968 = vmatprep.subr.bf16.mxu0 %v1250_v5 }
  0x54   : > { %969 = vmatpush3.bf16.msra.mxu0 %v1095_v55 }
  0xfd   : > { %v432_v16 = vpop.f32.mrf.mxu1 }
  0xfe   : > { %v433_v23 = vadd.f32 %v432_v16, %v350_v19 }
  0xff   : > { %v434_v17 = vpop.f32.mrf.mxu1 }
 0x100   : > { %v435_v18 = vadd.f32 %v434_v17, %v354_v14  ;;  %v479_v24 = vpack.c.bf16 %v433_v23, %v433_v23 }
 0x101   : > { %v436_v20 = vpop.f32.mrf.mxu1 }
 0x102   : > { %v480_v21 = vpack.c.bf16 %v435_v18, %v435_v18 }
 0x103   : > { %v437_v22 = vpop.f32.mrf.mxu1 }
 0x104   : > { %943 = vmatpush3.bf16.xpose.msra.mxu1 %v480_v21 }
 0x105   : > { %948 = vmatprep.subr.bf16.mxu1 %v1250_v5  ;;  %v473_v27 = vpop.f32.mrf.mxu1 }
 0x106   : > { %v474_v28 = vadd.f32 %v473_v27, %v358_v26 }
 0x107   : > { %v940_v29 = vpop.f32.mrf.mxu1 }
 0x108   : > { %v481_v30 = vpack.c.bf16 %v474_v28, %v474_v28 }
 0x109   : > { %v476_v31 = vpop.f32.mrf.mxu1 }
 0x10a   : > { %v541_v32 = vsel %vm539_vm3, %v481_v30, 0 }
 0x10b   : > { %945 = vmatmul.mubr.bf16.vlgmr.msra.gmra.mxu1 %v479_v24  ;;  %v941_v33 = vpop.f32.mrf.mxu1 }
 0x10c   : > { %950 = vmatprep.mubr.msk.bf16.mxu1 %vm1251_vm2, %v1250_v5  ;;  %949 = vmatpush3.bf16.msra.mxu1 %v541_v32 }
 0x1cb   : > { %v516_v34 = vpop.f32.mrf.mxu1 }
 0x1cc   : > { %v523_v35 = vsel %vm522_vm4, %v516_v34, -inf }
 0x1cd   : > { %524 = vmax.xlane.f32.xlu0 %v523_v35  ;;  %v946_v36 = vpop.f32.mrf.mxu1 }
 0x1cf   : > { %v519_v37 = vpop.f32.mrf.mxu1 }
 0x1d1   : > { %v947_v38 = vpop.f32.mrf.mxu1 }
 0x256   : > { %v525_v39 = vpop.xlane.xlu0 %524 }
 0x257   : > { %v526_v40 = vsub.f32 %v516_v34, %v525_v39 }
 0x259   : > { %v527_v41 = vmul.f32 1.442695, %v526_v40 }
 0x25b   : > { %1096 = vpow2.f32 %v527_v41 }
 0x268   : > { %v1097_v42 = vpop.eup %1096 }
 0x269   : > { %v529_v43 = vsel %vm522_vm4, %v1097_v42, 0.0 }
 0x26a   : > { %530 = vadd.xlane.f32.xlu0 %v529_v43 }
 0x2f3   : > { %v531_v51 = vpop.xlane.xlu0 %530 }
 0x2f4   : > { %1098 = vrcp.f32 %v531_v51 }
 0x301   : > { %v1099_v52 = vpop.eup %1098 }
 0x302   : > { %v533_v53 = vmul.f32 %v1099_v52, %v1097_v42 }
 0x304   : > { %534 = vst.msk [vmem:[%s310_s30] sm:$0xff] %vm522_vm4, %v533_v53  ;;  %v535_v54 = vpack.c.bf16 %v533_v53, %v533_v53 }
 0x306   : > { %951 = vmatmul.mubr.msk.bf16.vlgmr.msra.gmra.mxu1 %vm522_vm4, %v535_v54 }
 0x3c6   : > { %v577_v56 = vpop.f32.mrf.mxu1 }
 0x3c7   : > { %v584_v57 = vpack.c.bf16 %v577_v56, %v577_v56 }
 0x3c8   : > { %v952_v58 = vpop.f32.mrf.mxu1 }
 0x3c9   : > { %971 = vmatmul.mubr.bf16.vlgmr.msra.gmra.mxu0 %v584_v57 }
 0x3ca   : > { %v580_v59 = vpop.f32.mrf.mxu1 }
 0x3cc   : > { %v953_v60 = vpop.f32.mrf.mxu1 }
 0x489   : > { %v683_v62 = vpop.f32.mrf.mxu0 }
 0x48a   : > { %v689_v63 = vadd.f32 %v683_v62, %v583_v61 }
 0x48b   : > { %v972_v0 = vpop.f32.mrf.mxu0  ;;  %694 = sbr.rel (%p908_p8) target bundleno = 1175 (0x497), region = 48 }
 0x48c   : > { %690 = vst.msk [vmem:[#allocation2] sm:$0xff] %vm394_vm1, %v689_v63 }
 0x48d   : > { %v686_v1 = vpop.f32.mrf.mxu0 }
 0x48f   : > { %v973_v2 = vpop.f32.mrf.mxu0 }
 0x490   : > { %v909_v4 = vld [vmem:[%s1570_s4] ss:$0 sm:$0xff] }
 0x493   : > { %v695_v3 = vld [vmem:[#allocation2] sm:$0xff] }
 0x494   : > { %v703_v5 = vadd.f32 %v909_v4, %v695_v3 }
 0x496   : > { %704 = vst.msk [vmem:[%s303_s8] sm:$0xff] %vm394_vm1, %v703_v5 }
 0x497 PF: > { %s912_s23 = sshll.u32 %s1234_s28, 7  ;;  %s724_s7 = sshll.u32 %s303_s8, 4  ;;  %s725_s7 = int_to_ptr.vmem [resolvable:$true] %s724_s7 }
 0x498   : > { %s722_s29 = scalar_lea.hbm %s1571_s5, %s912_s23  ;;  %s1611_s10 = sand.u32 1, %s1222_s25  }
 0x499   : > { %s706_s11 = scalar_lea.sflag [#allocation4], %s1611_s10  ;;  %s1100_s18 = scalar_lea.vmem %s725_s7, 128 }
 0x49a   : > { %p1101_p9 = scmp.ne.s32.totalorder %s725_s7, %s1100_s18  ;;  %s1252_s9 = smov [#allocation3]  }
 0x49b   : > { %s1104_s12 = sshll.u32 %s1252_s9, 4  ;;  %s1105_s12 = int_to_ptr.vmem [resolvable:$false] %s1104_s12 }
 0x49c   : > { %p1102_p10 = pnand %p1101_p9, %p1360_p3  ;;  %s1106_s13 = scalar_lea.vmem %s1105_s12, 256 }
 0x49d   : > { %p1107_p0 = scmp.lt.s32.totalorder %s725_s7, %s1105_s12  ;;  %p1108_p1 = scmp.lt.s32.totalorder %s1106_s13, %s1100_s18 }
 0x49e   : > { %p1103_p11 = pneg %p1102_p10 }
 0x49f   : > { %p1109_p4 = por %p1108_p1, %p1107_p0 }
 0x4a1   : > { %p1110_p2 = pnand %p1109_p4, %p1103_p11 }
 0x4a3   : > { %1113 = shalt.err (!%p1110_p2)
}
 0x4a4   : > { %s1114_s19 = scalar_lea.hbm %s722_s29, 128  ;;  %s1118_s20 = scalar_lea.hbm %s1571_s5, 256 }
 0x4a5   : > { %p1115_p5 = scmp.ne.s32.totalorder %s722_s29, %s1114_s19  ;;  %p1119_p9 = scmp.lt.s32.totalorder %s722_s29, %s1571_s5 }
 0x4a6   : > { %p1120_p10 = scmp.lt.s32.totalorder %s1118_s20, %s1114_s19 }
 0x4a7   : > { %p1116_p6 = pnand %p1115_p5, %p1360_p3 }
 0x4a8   : > { %p1121_p13 = por %p1120_p10, %p1119_p9 }
 0x4a9   : > { %p1117_p8 = pneg %p1116_p6 }
 0x4ab   : > { %p1122_p7 = pnand %p1121_p13, %p1117_p8 }
 0x4ad   : > { %1125 = shalt.err (!%p1122_p7)
}
 0x4ae   : > { %976 = dma.vmem_to_hbm [thread:$0]  (%p1360_p3), %s725_s7, 128, %s722_s29, %s706_s11  }
 0x4af   : > { %s913_s23 = sshll.u32 %s1234_s28, 3  ;;  %s739_s24 = sshll.u32 %s310_s30, 4  ;;  %s740_s24 = int_to_ptr.vmem [resolvable:$true] %s739_s24 }
 0x4b0   : > { %s735_s26 = sadd.s32 %s1230_s27, %s913_s23  ;;  %s1613_s12 = sld [smem:[#allocation23_spill]] }
 0x4b1   : > { %s914_s10 = sshll.u32 %s735_s26, 7  ;;  %s1614_s19 = sand.u32 1, %s1210_s22  }
 0x4b2   : > { %s711_s8 = scalar_lea.sflag [#allocation6], %s1614_s19  ;;  %s1126_s15 = scalar_lea.vmem %s740_s24, 128 }
 0x4b3   : > { %p1127_p7 = scmp.ne.s32.totalorder %s740_s24, %s1126_s15  ;;  %s1253_s14 = smov [#allocation5]  }
 0x4b4   : > { %s1130_s20 = sshll.u32 %s1253_s14, 4  ;;  %s1131_s20 = int_to_ptr.vmem [resolvable:$false] %s1130_s20 }
 0x4b5   : > { %p1128_p13 = pnand %p1127_p7, %p1389_p12  ;;  %s1132_s28 = scalar_lea.vmem %s1131_s20, 256 }
 0x4b6   : > { %s737_s13 = scalar_lea.hbm %s1613_s12, %s914_s10  ;;  %p1133_p3 = scmp.lt.s32.totalorder %s740_s24, %s1131_s20 }
 0x4b7   : > { %p1129_p11 = pneg %p1128_p13  ;;  %p1134_p0 = scmp.lt.s32.totalorder %s1132_s28, %s1126_s15 }
 0x4b9   : > { %p1135_p1 = por %p1134_p0, %p1133_p3 }
 0x4bb   : > { %p1136_p4 = pnand %p1135_p1, %p1129_p11 }
 0x4bd   : > { %1139 = shalt.err (!%p1136_p4)
}
 0x4be   : > { %s1140_s27 = scalar_lea.hbm %s737_s13, 128  ;;  %s1144_s29 = scalar_lea.hbm %s1613_s12, 2048 }
 0x4bf   : > { %p1141_p2 = scmp.ne.s32.totalorder %s737_s13, %s1140_s27  ;;  %p1145_p8 = scmp.lt.s32.totalorder %s737_s13, %s1613_s12 }
 0x4c0   : > { %p1146_p9 = scmp.lt.s32.totalorder %s1144_s29, %s1140_s27 }
 0x4c1   : > { %p1142_p5 = pnand %p1141_p2, %p1389_p12 }
 0x4c2   : > { %p1147_p10 = por %p1146_p9, %p1145_p8 }
 0x4c3   : > { %p1143_p6 = pneg %p1142_p5 }
 0x4c5   : > { %p1148_p7 = pnand %p1147_p10, %p1143_p6 }
 0x4c7   : > { %1151 = shalt.err (!%p1148_p7)
}
 0x4c8   : > { %977 = dma.vmem_to_hbm [thread:$0]  (%p1389_p12), %s740_s24, 128, %s737_s13, %s711_s8  }
 0x4c9 PF: > { %s1615_s17 = sld [smem:[#allocation15_spill]] }
 0x4ca   : > { %s1616_s6 = sld [smem:[#allocation11_spill]] }
 0x4cb   : > { %s1617_s23 = sld [smem:[#allocation18_spill]] }
 0x4cf   : > { %p987_p13 = scmp.ge.s32.totalorder %s1615_s17, 2 }
 0x4d0   : > { %s751_s26 = sand.u32 1, %s1616_s6  }
 0x4d1   : > { %p1618_p11 = scmp.ne.s32.totalorder %s1617_s23, 0  ;;  %s752_s10 = scalar_lea.sflag [#allocation4], %s751_s26 }
 0x4d3   : > { %p981_p3 = pnand %p987_p13, %p1618_p11 }
 0x4d5   : > { %p982_p0 = pneg %p981_p3 }
 0x4d7   : > { %1197 = dma.done.wait (%p982_p0), %s752_s10, 128  }
 0x4d8   : > { %1199 = vsyncadd (%p982_p0), %s752_s10, 4294967168  ;;  %s1619_s18 = sld [smem:[#allocation9_spill]] }
 0x4d9   : > { %s1620_s9 = sld [smem:[#allocation22_spill]] }
 0x4de   : > { %s760_s19 = sand.u32 1, %s1619_s18  }
 0x4df   : > { %p1621_p1 = scmp.ne.s32.totalorder %s1620_s9, 0  ;;  %s761_s21 = scalar_lea.sflag [#allocation6], %s760_s19 }
 0x4e1   : > { %p984_p4 = pnand %p987_p13, %p1621_p1 }
 0x4e3   : > { %p985_p2 = pneg %p984_p4 }
 0x4e5   : > { %1201 = dma.done.wait (%p985_p2), %s761_s21, 128  }
 0x4e6   : > { %1203 = vsyncadd (%p985_p2), %s761_s21, 4294967168  ;;  %s23_s7 = sadd.s32 1, %s1615_s17   ;;  %s1622_s24 = sld [smem:[#allocation10_spill]] }
 0x4e7   : > { %p20_p12 = scmp.ge.s32.totalorder %s23_s7, 18   ;;  %s1623_s23 = sld [smem:[#allocation21_spill]] }
 0x4e8   : > { %s1624_s13 = sld [smem:[#allocation12_spill]]  ;;  %s1630_s21 = smov %s1210_s22 }
 0x4e9   : > { %s1625_s26 = sld [smem:[#allocation20_spill]] }
 0x4ea   : > { %s1626_s27 = sld [smem:[#allocation13_spill]]  ;;  %22 = sbr.rel (!%p20_p12) target bundleno = 11 (0xb), region = 109 }
 0x4eb   : > { %s1627_s28 = sld [smem:[#allocation14_spill]] }
 0x4ec   : > { %s1628_s29 = sld [smem:[#allocation16_spill]]  ;;  %s1631_s22 = smov %s1622_s24 }
 0x4ed   : > { %s1629_s30 = sld [smem:[#allocation17_spill]]  ;;  %s1632_s24 = smov %s1222_s25 }
 0x4ee   : > { %s1633_s25 = smov %s1624_s13 }
 0x4ef   :  { %766 = vsyncpa [#allocation4], 1 }
 0x4f0   :  { %768 = vsyncpa [#allocation4 + $0x1], 1 }
 0x4f1   :  { %769 = vsyncpa [#allocation6], 1 }
 0x4f2   :  { %771 = vsyncpa [#allocation6 + $0x1], 1 }

</bundles_post_ra>
